<compile_context>
chip_gen: v6e
topology: v6e:2x2x1
jax: 0.10.0
libtpu: 0.0.40
codegen_flags: <defaults>
</compile_context>

<pallas_src>
import jax
import jax.numpy as jnp
from jax.experimental import pallas as pl
from jax.experimental.pallas import tpu as pltpu


def simplenet_kernel(x_ref, p_ref, o_ref):
    # x_ref : (1, N)      batch on the lane axis
    # p_ref : (4*Hp, 1)   rows [0:Hp)=w1, [Hp:2Hp)=b1, [2Hp:3Hp)=w2, row 3Hp=b2
    # o_ref : (1, N)
    Hp = p_ref.shape[0] // 4

    x = x_ref[...]                                   # (1, N)
    w1 = p_ref[0:Hp, :]                              # (Hp, 1)
    b1 = p_ref[Hp:2 * Hp, :]                         # (Hp, 1)
    w2 = p_ref[2 * Hp:3 * Hp, :]                     # (Hp, 1)
    b2 = p_ref[3 * Hp:3 * Hp + 1, :]                 # (1, 1)

    # hidden = relu(x * w1 + b1): VPU broadcast (1,N) x (Hp,1) -> (Hp,N)
    h = jnp.maximum(x * w1 + b1, 0.0)                # (Hp, N)
    # predict = sum_H(h * w2) + b2: XLU sublane reduce + broadcast add
    out = jnp.sum(h * w2, axis=0, keepdims=True)     # (1, N)
    o_ref[...] = (out + b2).astype(o_ref.dtype)


def pack_params(w1, b1, w2, b2):
    """Pack (w1, b1, w2, b2) once into a single sublane-aligned VMEM buffer.

    w1: (1, H); b1: (1, H); w2: (H, 1); b2: (1, 1)  ->  (4*Hp, 1) f32.
    Call this ONCE and reuse the result across forward calls (weights are constant).
    """
    H = w1.shape[1]
    SUB = 8
    Hp = ((H + SUB - 1) // SUB) * SUB
    p = jnp.zeros((4 * Hp, 1), jnp.float32)
    p = p.at[0:H, 0].set(w1[0, :])
    p = p.at[Hp:Hp + H, 0].set(b1[0, :])
    p = p.at[2 * Hp:2 * Hp + H, 0].set(w2[:, 0])
    p = p.at[3 * Hp, 0].set(b2[0, 0])
    return p


def simplenet_forward(x, packed_params):
    """x: (N, 1) f32; packed_params: output of pack_params. Returns (N, 1)."""
    N, F = x.shape
    assert F == 1, "VPU fast path is specialized for n_features == 1"

    x_lane = x.reshape(1, N)  # free row-major reshape, batch on lanes

    out = pl.pallas_call(
        simplenet_kernel,
        out_shape=jax.ShapeDtypeStruct((1, N), x.dtype),
        in_specs=[
            pl.BlockSpec(memory_space=pltpu.MemorySpace.VMEM),  # x (1, N)
            pl.BlockSpec(memory_space=pltpu.MemorySpace.VMEM),  # packed params
        ],
        out_specs=pl.BlockSpec(memory_space=pltpu.MemorySpace.VMEM),
    )(x_lane, packed_params)

    return out.reshape(N, 1)  # PyTorch (N, 1) convention


def init_params(key, n_features, n_hidden, n_output):
    """Deterministic init mimicking torch.nn.Linear default U[-1/sqrt(fan_in), +...]."""
    k1, k2, k3, k4 = jax.random.split(key, 4)
    bound1 = 1.0 / jnp.sqrt(jnp.float32(n_features))
    bound2 = 1.0 / jnp.sqrt(jnp.float32(n_hidden))
    # stored as (in, out) so the math is x @ W
    w1 = jax.random.uniform(k1, (n_features, n_hidden), jnp.float32, -bound1, bound1)
    b1 = jax.random.uniform(k2, (1, n_hidden), jnp.float32, -bound1, bound1)
    w2 = jax.random.uniform(k3, (n_hidden, n_output), jnp.float32, -bound2, bound2)
    b2 = jax.random.uniform(k4, (1, n_output), jnp.float32, -bound2, bound2)
    return w1, b1, w2, b2


if __name__ == "__main__":
    # Shapes implied by the reference script:
    # x = linspace(-1, 1, 100).unsqueeze(1) -> (100, 1); SimpleNet(1, 10, 1)
    n_features, n_hidden, n_output = 1, 10, 1
    N = 100

    key = jax.random.PRNGKey(0)
    w1, b1, w2, b2 = init_params(key, n_features, n_hidden, n_output)

    # One-time (cached) parameter packing — off the per-call critical path.
    packed = jax.block_until_ready(pack_params(w1, b1, w2, b2))

    # Deterministic input matching the PyTorch script.
    x = jnp.linspace(-1.0, 1.0, N, dtype=jnp.float32).reshape(N, 1)

    y = simplenet_forward(x, packed)
    y = jax.block_until_ready(y)

    # Pure-JAX reference check of the forward semantics.
    y_ref = jnp.maximum(x @ w1 + b1, 0.0) @ w2 + b2
    assert y.shape == (N, n_output)
    assert jnp.allclose(y, y_ref, atol=1e-5, rtol=1e-5)

    print("KERNEL_OK")
</pallas_src>

<mosaic_0001>
module attributes {stable_mosaic.version = 11 : i64} {
  func.func @simplenet_kernel(%arg0: memref<1x100xf32, #tpu.memory_space<vmem>>, %arg1: memref<64x1xf32, #tpu.memory_space<vmem>>, %arg2: memref<1x100xf32, #tpu.memory_space<vmem>>) attributes {dimension_semantics = [], scalar_prefetch = 0 : i64, scratch_operands = 0 : i64, tpu.core_type = #tpu.core_type<tc>} {
    %c0 = arith.constant 0 : index
    %c0_0 = arith.constant 0 : index
    %0 = vector.load %arg0[%c0, %c0_0] : memref<1x100xf32, #tpu.memory_space<vmem>>, vector<1x100xf32>
    %c0_1 = arith.constant 0 : index
    %c0_2 = arith.constant 0 : index
    %1 = vector.load %arg1[%c0_1, %c0_2] : memref<64x1xf32, #tpu.memory_space<vmem>>, vector<16x1xf32>
    %c16 = arith.constant 16 : index
    %c0_3 = arith.constant 0 : index
    %2 = vector.load %arg1[%c16, %c0_3] : memref<64x1xf32, #tpu.memory_space<vmem>>, vector<16x1xf32>
    %c32 = arith.constant 32 : index
    %c0_4 = arith.constant 0 : index
    %3 = vector.load %arg1[%c32, %c0_4] : memref<64x1xf32, #tpu.memory_space<vmem>>, vector<16x1xf32>
    %c48 = arith.constant 48 : index
    %c0_5 = arith.constant 0 : index
    %4 = vector.load %arg1[%c48, %c0_5] : memref<64x1xf32, #tpu.memory_space<vmem>>, vector<1x1xf32>
    %5 = vector.broadcast %0 : vector<1x100xf32> to vector<16x100xf32>
    %6 = vector.broadcast %1 : vector<16x1xf32> to vector<16x100xf32>
    %7 = arith.mulf %5, %6 : vector<16x100xf32>
    %8 = vector.broadcast %2 : vector<16x1xf32> to vector<16x100xf32>
    %9 = arith.addf %7, %8 : vector<16x100xf32>
    %cst = arith.constant 0.000000e+00 : f32
    %10 = vector.broadcast %cst : f32 to vector<16x100xf32>
    %11 = arith.maximumf %9, %10 : vector<16x100xf32>
    %12 = vector.broadcast %3 : vector<16x1xf32> to vector<16x100xf32>
    %13 = arith.mulf %11, %12 : vector<16x100xf32>
    %cst_6 = arith.constant dense<0.000000e+00> : vector<100xf32>
    %14 = vector.multi_reduction <add>, %13, %cst_6 [0] : vector<16x100xf32> to vector<100xf32>
    %15 = vector.shape_cast %14 : vector<100xf32> to vector<1x100xf32>
    %16 = vector.broadcast %4 : vector<1x1xf32> to vector<1x100xf32>
    %17 = arith.addf %15, %16 : vector<1x100xf32>
    %c0_7 = arith.constant 0 : index
    %c0_8 = arith.constant 0 : index
    %18 = vector.load %arg2[%c0_7, %c0_8] : memref<1x100xf32, #tpu.memory_space<vmem>>, vector<1x100xf32>
    tpu.vector_store %arg2[%c0_7, %c0_8], %17 {strides = array<i32>} : memref<1x100xf32, #tpu.memory_space<vmem>>, vector<1x100xf32>,
    return
  }
}

</mosaic_0001>

<bundles_post_ra>
// kernel: tpu_custom_call.1
= control target key start
LH: loop header
LB: loop body
LE: loop exit
PB: predicated region body
PF: predicated region fallthrough
CT: control target
= control target key end

     0   :  { %v123_v2 = vmov 0   ;;  %s167_s0 = inlined_call_operand.vmem [shape: f32[1,100], index: 0, kind: input, shape index: {}]   ;;  %s168_s1 = inlined_call_operand.vmem [shape: f32[64,1], index: 1, kind: input, shape index: {}]   ;;  %s169_s2 = inlined_call_operand.hbm [shape: f32[1,100], index: 2, kind: output, shape index: {}]  }
   0x1   :  { %v15_v0 = vld [vmem:[%s168_s1 + $0x10] sm:$0xff]  ;;  %v13_v1 = vld [vmem:[%s168_s1] sm:$0xff]  ;;  %100 = vset.pattern.permute.xlu1 %v123_v2  ;;  %99 = vset.pattern.permute.xlu0 %v123_v2 }
   0x2   :  { %40 = vperm.xlu1 %100, %v15_v0   ;;  %28 = vperm.xlu0 %99, %v13_v1  }
   0x3   :  { %7 = vsyncpa [#allocation3], 0  ;;  %v16_v3 = vld [vmem:[%s168_s1 + $0x18] sm:$0xff]  ;;  %v14_v4 = vld [vmem:[%s168_s1 + $0x8] sm:$0xff]  ;;  %vm64_vm0 = vcmask 818176   ;;  %vm80_vm1 = vcmask 811008  }
   0x4   :  { %v18_v5 = vld [vmem:[%s168_s1 + $0x28] sm:$0xff]  ;;  %v17_v6 = vld [vmem:[%s168_s1 + $0x20] sm:$0xff]  ;;  %v19_v7 = vld [vmem:[%s168_s1 + $0x30] sm:$0x1] }
   0x5   :  { %v96_v8 = vld [vmem:[%s167_s0] ss:$0 sm:$0xff]  ;;  %s124_s0 = smov [#allocation2]  }
   0x6   :  { %45 = vperm.xlu1 %100, %v16_v3   ;;  %33 = vperm.xlu0 %99, %v14_v4   ;;  %s88_s1 = sshll.u32 %s124_s0, 4  ;;  %s89_s1 = int_to_ptr.vmem [resolvable:$true] %s88_s1 }
   0x7   :  { %s101_s25 = scalar_lea.vmem %s89_s1, 16  ;;  %s105_s26 = scalar_lea.vmem %s89_s1, 32 }
   0x8   :  { %p102_p0 = scmp.ne.s32.totalorder %s89_s1, %s101_s25  ;;  %p106_p1 = scmp.lt.s32.totalorder %s89_s1, %s89_s1 }
   0x9   :  { %p107_p2 = scmp.lt.s32.totalorder %s105_s26, %s101_s25 }
   0xa   :  { %59 = vperm.xlu1 %100, %v18_v5   ;;  %54 = vperm.xlu0 %99, %v17_v6  }
   0xb   :  { %p108_p3 = por %p107_p2, %p106_p1 }
   0xd   :  { %p109_p4 = pnand %p108_p3, %p102_p0 }
   0xe   :  { %76 = vperm.xlu0 %99, %v19_v7  }
  0x7d   :  { %v41_v9 = vpop.permute.xlu1 %40  ;;  %v29_v10 = vpop.permute.xlu0 %28 }
  0x7e   :  { %v36_v11 = vmul.f32 %v96_v8, %v29_v10 }
  0x80   :  { %v48_v12 = vadd.f32 %v41_v9, %v36_v11 }
  0x81   :  { %v46_v13 = vpop.permute.xlu1 %45  ;;  %v34_v14 = vpop.permute.xlu0 %33 }
  0x82   :  { %v37_v15 = vmul.f32 %v96_v8, %v34_v14  ;;  %v50_v17 = vmax.f32 %v48_v12, 0.0 }
  0x84   :  { %v49_v16 = vadd.f32 %v46_v13, %v37_v15 }
  0x85   :  { %v55_v18 = vpop.permute.xlu0 %54  ;;  %v60_v21 = vpop.permute.xlu1 %59 }
  0x86   :  { %v51_v19 = vmax.f32 %v49_v16, 0.0  ;;  %v62_v20 = vmul.f32 %v55_v18, %v50_v17 }
  0x88   :  { %v63_v22 = vmul.f32 %v60_v21, %v51_v19  ;;  %v65_v24 = vsel %vm64_vm0, %v62_v20, 0.0 }
  0x89   :  { %v77_v32 = vpop.permute.xlu0 %76 }
  0x8a   :  { %v66_v23 = vsel %vm64_vm0, %v63_v22, 0.0 }
  0x8b   :  { %v67_v25 = vadd.f32 %v66_v23, %v65_v24 }
  0x8d   :  { %v68_v26 = vrot.slane %v67_v25, 4 }
  0x8f   :  { %v69_v27 = vadd.f32 %v68_v26, %v67_v25 }
  0x91   :  { %v70_v28 = vrot.slane %v69_v27, 2 }
  0x93   :  { %v71_v29 = vadd.f32 %v70_v28, %v69_v27 }
  0x95   :  { %v72_v30 = vrot.slane %v71_v29, 1 }
  0x97   :  { %v73_v31 = vadd.f32 %v72_v30, %v71_v29 }
  0x99   :  { %v79_v33 = vadd.f32 %v77_v32, %v73_v31 }
  0x9b   :  { %81 = vst.msk [vmem:[#allocation2] sm:$0x1] %vm80_vm1, %v79_v33 }
  0x9c   :  { %112 = shalt.err (!%p109_p4)
}
  0x9d   :  { %91 = dma.vmem_to_hbm [thread:$0]  %s89_s1, 16, %s169_s2, [#allocation3]  }
  0x9e   :  { %121 = dma.done.wait [#allocation3], 16  }
  0x9f   :  { %122 = vsyncadd [#allocation3], 4294967280 }
  0xa0   :  { %95 = vsyncpa [#allocation3], 1 }

</bundles_post_ra>
